<compile_context>
chip_gen: v5e
topology: v5e:2x2
jax: 0.10.0
libtpu: 0.0.40
codegen_flags: <defaults>
</compile_context>

<pallas_src>
import functools
import math

import jax
import jax.numpy as jnp
from jax import lax
from jax.experimental import pallas as pl
from jax.experimental.pallas import tpu as pltpu


def _round_up(a: int, b: int) -> int:
    return (a + b - 1) // b * b


def _ar_mse_kernel(x_ref, y_ref, out_ref, *, use_roll: bool):
    """One grid step: shifted squared error over a (row_tile, T) tile, reduced
    in-kernel to a lane-dense (1, 8, 128) partial-sum tile (sums in lane 0)."""
    rows, T = x_ref.shape

    # Cast to f32 *before* subtracting (avoids bf16 cancellation; VPU-cheap).
    x = x_ref[...].astype(jnp.float32)
    y = y_ref[...].astype(jnp.float32)

    if use_roll:
        # Lane-aligned path (T % 128 == 0): full-width roll on the XLU, then a
        # lane mask.  Keeps everything in aligned (8, 128) vregs — no shifted
        # VMEM copy, no masked partial stores.
        x_shift = pltpu.roll(x, shift=1, axis=1)      # x_shift[:, j] = x[:, j-1]
        diff = x_shift - y                            # column j>=1: x[j-1] - y[j]
        sq = diff * diff
        lane = lax.broadcasted_iota(jnp.int32, (rows, T), 1)
        sq = jnp.where(lane >= 1, sq, 0.0)            # drop the wrapped column 0
        width = T
    else:
        # Fallback for lane-unaligned T (small sequences): static slices.
        xs = x[:, : T - 1]                            # input[...,  :-1]
        ys = y[:, 1:]                                 # target[..., 1: ]
        diff = xs - ys
        sq = diff * diff
        width = T - 1

    # Fold row-groups of 8 into a vreg-shaped (8, width) slab with pure VPU
    # elementwise adds (splitting the 8-aligned sublane dim is layout-cheap).
    folded = jnp.sum(sq.reshape(rows // 8, 8, width), axis=0)

    # Finish the reduction on the otherwise-idle XLU: per-sublane lane reduce.
    row_sums = jnp.sum(folded, axis=-1, keepdims=True)          # (8, 1)

    # Lane-dense output tile: partial sums in lane 0, zeros elsewhere, so the
    # wrapper's jnp.sum over all partials is exact and stores are full vst.
    lane = lax.broadcasted_iota(jnp.int32, (8, 128), 1)
    out_ref[...] = jnp.where(lane == 0, row_sums, 0.0).reshape(1, 8, 128)


def autoregressive_mse_loss(
    inp: jax.Array,
    tgt: jax.Array,
    *,
    target_block_bytes: int = 4 * 1024 * 1024,
    vmem_budget_bytes: int = 40 * 1024 * 1024,
) -> jax.Array:
    """AutoRegressiveWrapper(MSELoss(reduction='mean'), dim=-1).forward(inp, tgt)."""
    assert inp.shape == tgt.shape, "input/target shapes must match"
    T = inp.shape[-1]
    assert T >= 2, "need at least 2 steps along the shifted dimension"

    R = math.prod(inp.shape[:-1]) if inp.ndim > 1 else 1
    x = inp.reshape(R, T)
    y = tgt.reshape(R, T)

    itemsize = jnp.dtype(inp.dtype).itemsize
    use_roll = (T % 128) == 0

    # Row-tile granularity matched to the native sublane packing of the input
    # dtype (8 for f32, 16 for bf16, 32 for 8-bit).
    sub = 8 * max(1, 4 // itemsize)

    # Dtype-aware per-row VMEM cost: 2 inputs x 2 pipeline buffers in the input
    # dtype + ~4 live f32 temporaries (x, y, shifted, squared) in the kernel.
    per_row_vmem = 2 * 2 * T * itemsize + 4 * T * 4

    def _down(v: int) -> int:
        return max(sub, (v // sub) * sub)

    rows_from_vmem = _down(vmem_budget_bytes // per_row_vmem)
    rows_from_block = _down(target_block_bytes // (T * itemsize))
    row_tile = max(sub, min(rows_from_vmem, rows_from_block, _round_up(R, sub)))

    # Zero-pad rows so the grid divides evenly; zero rows add exactly 0 to the
    # sum of squared differences, and the mean below uses the true count.
    Rp = _round_up(R, row_tile)
    if Rp != R:
        pad = Rp - R
        x = jnp.pad(x, ((0, pad), (0, 0)))
        y = jnp.pad(y, ((0, pad), (0, 0)))
    num_blocks = Rp // row_tile

    # Scoped-VMEM limit: actual need + headroom, floored at 32 MiB (v5e default
    # is only 16 MiB) and capped at 48 MiB (v7x physical VMEM is 64 MiB/TC).
    vmem_need = row_tile * per_row_vmem + 2 * 8 * 128 * 4 + (4 << 20)
    vmem_limit = int(min(48 * 1024 * 1024, max(32 * 1024 * 1024, vmem_need)))

    partials = pl.pallas_call(
        functools.partial(_ar_mse_kernel, use_roll=use_roll),
        out_shape=jax.ShapeDtypeStruct((num_blocks, 8, 128), jnp.float32),
        grid_spec=pltpu.PrefetchScalarGridSpec(
            num_scalar_prefetch=0,
            grid=(num_blocks,),
            in_specs=[
                pl.BlockSpec((row_tile, T), lambda i: (i, 0)),
                pl.BlockSpec((row_tile, T), lambda i: (i, 0)),
            ],
            out_specs=pl.BlockSpec((1, 8, 128), lambda i: (i, 0, 0)),
        ),
        compiler_params=pltpu.CompilerParams(
            # Per-block partials are independent -> parallel grid axis
            # (lets the v7x megacore shard the loop; neutral on v5e/v6e).
            dimension_semantics=("parallel",),
            vmem_limit_bytes=vmem_limit,
        ),
    )(x, y)

    # Single tiny reduction outside the kernel: mean over the true count.
    total = jnp.sum(partials, dtype=jnp.float32)
    return total / float(R * (T - 1))


def autoregressive_mse_loss_ref(inp: jax.Array, tgt: jax.Array) -> jax.Array:
    """Pure-JAX reference matching the PyTorch module with MSELoss('mean')."""
    shifted_input = inp[..., :-1].astype(jnp.float32)
    shifted_target = tgt[..., 1:].astype(jnp.float32)
    diff = shifted_input - shifted_target
    return jnp.mean(diff * diff)


if __name__ == "__main__":
    key = jax.random.PRNGKey(0)
    k1, k2, k3, k4 = jax.random.split(key, 4)

    # Small shapes consistent with the module: batch=2, channels=4, seq=16
    # (exercises the lane-unaligned slice path).
    B, C, T = 2, 4, 16
    inp = jax.random.normal(k1, (B, C, T), dtype=jnp.float32)
    tgt = jax.random.normal(k2, (B, C, T), dtype=jnp.float32)
    loss = jax.block_until_ready(autoregressive_mse_loss(inp, tgt))
    ref = autoregressive_mse_loss_ref(inp, tgt)
    assert jnp.allclose(loss, ref, rtol=1e-5, atol=1e-5), (loss, ref)

    # Lane-aligned sequence (T % 128 == 0, bf16) -> exercises the pltpu.roll path.
    B2, C2, T2 = 2, 4, 128
    inp2 = jax.random.normal(k3, (B2, C2, T2), dtype=jnp.bfloat16)
    tgt2 = jax.random.normal(k4, (B2, C2, T2), dtype=jnp.bfloat16)
    loss2 = jax.block_until_ready(autoregressive_mse_loss(inp2, tgt2))
    ref2 = autoregressive_mse_loss_ref(inp2, tgt2)
    assert jnp.allclose(loss2, ref2, rtol=1e-3, atol=1e-3), (loss2, ref2)

    print("KERNEL_OK")
</pallas_src>

<mosaic_0001>
module attributes {stable_mosaic.version = 11 : i64} {
  func.func @_ar_mse_kernel(%arg0: i32, %arg1: memref<8x16xf32, #tpu.memory_space<vmem>>, %arg2: memref<8x16xf32, #tpu.memory_space<vmem>>, %arg3: memref<1x8x128xf32, #tpu.memory_space<vmem>>) attributes {dimension_semantics = [#tpu.dimension_semantics<parallel>], iteration_bounds = array<i64: 1>, scalar_prefetch = 0 : i64, scratch_operands = 0 : i64, tpu.core_type = #tpu.core_type<tc>, window_params = [{transform_indices = @transform_0, window_bounds = array<i64: 8, 16>}, {transform_indices = @transform_1, window_bounds = array<i64: 8, 16>}, {transform_indices = @transform_2, window_bounds = array<i64: 1, 8, 128>}]} {
    %c0 = arith.constant 0 : index
    %c0_0 = arith.constant 0 : index
    %0 = vector.load %arg1[%c0, %c0_0] : memref<8x16xf32, #tpu.memory_space<vmem>>, vector<8x16xf32>
    %c0_1 = arith.constant 0 : index
    %c0_2 = arith.constant 0 : index
    %1 = vector.load %arg2[%c0_1, %c0_2] : memref<8x16xf32, #tpu.memory_space<vmem>>, vector<8x16xf32>
    %2 = vector.extract_strided_slice %0 {offsets = [0, 0], sizes = [8, 15], strides = [1, 1]} : vector<8x16xf32> to vector<8x15xf32>
    %3 = vector.extract_strided_slice %1 {offsets = [0, 1], sizes = [8, 15], strides = [1, 1]} : vector<8x16xf32> to vector<8x15xf32>
    %4 = arith.subf %2, %3 : vector<8x15xf32>
    %5 = arith.mulf %4, %4 : vector<8x15xf32>
    %6 = vector.shape_cast %5 : vector<8x15xf32> to vector<1x8x15xf32>
    %cst = arith.constant dense<0.000000e+00> : vector<8x15xf32>
    %7 = vector.multi_reduction <add>, %6, %cst [0] : vector<1x8x15xf32> to vector<8x15xf32>
    %cst_3 = arith.constant dense<0.000000e+00> : vector<8xf32>
    %8 = vector.multi_reduction <add>, %7, %cst_3 [1] : vector<8x15xf32> to vector<8xf32>
    %9 = vector.shape_cast %8 : vector<8xf32> to vector<8x1xf32>
    %10 = tpu.iota {dimensions = array<i32: 1>} : vector<8x128xi32>
    %c0_i32 = arith.constant 0 : i32
    %11 = vector.broadcast %c0_i32 : i32 to vector<8x128xi32>
    %12 = arith.cmpi eq, %10, %11 : vector<8x128xi32>
    %cst_4 = arith.constant 0.000000e+00 : f32
    %13 = vector.shape_cast %9 : vector<8x1xf32> to vector<8x1xf32>
    %14 = vector.broadcast %13 : vector<8x1xf32> to vector<8x128xf32>
    %15 = vector.broadcast %cst_4 : f32 to vector<8x128xf32>
    %16 = arith.select %12, %14, %15 : vector<8x128xi1>, vector<8x128xf32>
    %17 = vector.shape_cast %16 : vector<8x128xf32> to vector<1x8x128xf32>
    %c0_5 = arith.constant 0 : index
    %c0_6 = arith.constant 0 : index
    %c0_7 = arith.constant 0 : index
    %18 = vector.load %arg3[%c0_5, %c0_6, %c0_7] : memref<1x8x128xf32, #tpu.memory_space<vmem>>, vector<1x8x128xf32>
    tpu.vector_store %arg3[%c0_5, %c0_6, %c0_7], %17 {strides = array<i32>} : memref<1x8x128xf32, #tpu.memory_space<vmem>>, vector<1x8x128xf32>,
    return
  }
  func.func @transform_0(%arg0: i32) -> (i32, i32) {
    %c0_i32 = arith.constant 0 : i32
    %c0_i32_0 = arith.constant 0 : i32
    return %arg0, %c0_i32 : i32, i32
  }
  func.func @transform_1(%arg0: i32) -> (i32, i32) {
    %c0_i32 = arith.constant 0 : i32
    %c0_i32_0 = arith.constant 0 : i32
    return %arg0, %c0_i32 : i32, i32
  }
  func.func @transform_2(%arg0: i32) -> (i32, i32, i32) {
    %c0_i32 = arith.constant 0 : i32
    %c0_i32_0 = arith.constant 0 : i32
    %c0_i32_1 = arith.constant 0 : i32
    return %arg0, %c0_i32, %c0_i32_0 : i32, i32, i32
  }
}

</mosaic_0001>

<bundles_post_ra>
// kernel: tpu_custom_call.1
= control target key start
LH: loop header
LB: loop body
LE: loop exit
PB: predicated region body
PF: predicated region fallthrough
CT: control target
= control target key end

     0   :  { %7 = vsyncpa [#allocation3], 0  ;;  %s186_s0 = inlined_call_operand.hbm [shape: f32[8,16], index: 0, kind: input, shape index: {}]   ;;  %s187_s1 = inlined_call_operand.hbm [shape: f32[8,16], index: 1, kind: input, shape index: {}]   ;;  %s188_s2 = inlined_call_operand.hbm [shape: f32[1,8,128], index: 2, kind: output, shape index: {}]  }
   0x1   :  { %8 = vsyncpa [#allocation6], 0 }
   0x2   :  { %9 = vsyncpa [#allocation4], 0  ;;  %s15_s11 = sshll.u32 %s186_s0, 4  ;;  %s158_s12 = smov [#allocation2]   ;;  %s16_s11 = int_to_ptr.hbm [resolvable:$true] %s15_s11 }
   0x3   :  { %s17_s13 = sshll.u32 %s158_s12, 4  ;;  %s26_s16 = sshll.u32 %s187_s1, 4  ;;  %s18_s13 = int_to_ptr.vmem [resolvable:$true] %s17_s13  ;;  %s27_s16 = int_to_ptr.hbm [resolvable:$true] %s26_s16 }
   0x4   :  { %20 = dma.hbm_to_vmem [thread:$0]  %s16_s11, 128, %s18_s13, [#allocation3]  }
   0x5   :  { %s159_s17 = smov [#allocation5]  }
   0x6   :  { %s28_s18 = sshll.u32 %s159_s17, 4  ;;  %s29_s18 = int_to_ptr.vmem [resolvable:$true] %s28_s18 }
   0x7   :  { %31 = dma.hbm_to_vmem [thread:$0]  %s27_s16, 128, %s29_s18, [#allocation6]  }
   0x8   :  { %152 = dma.done.wait [#allocation3], 128  }
   0x9   :  { %153 = vsyncadd [#allocation3], 4294967168 }
   0xa   :  { %154 = dma.done.wait [#allocation6], 128  }
   0xb   :  { %155 = vsyncadd [#allocation6], 4294967168  ;;  %v41_v0 = vld [vmem:[#allocation5] sm:$0xff]  ;;  %s160_s0 = smov 127   ;;  %v40_v1 = vld [vmem:[#allocation2] sm:$0xff]  ;;  %vm49_vm0 = vcmask 121856   ;;  %v53_v6 = vlaneseq }
   0xc   :  { %43 = vrot.lane.b32.xlu0 %v41_v0, %s160_s0  ;;  %s161_s1 = smov [#allocation7]   ;;  %s65_s22 = sshll.u32 %s188_s2, 4  ;;  %s66_s22 = int_to_ptr.hbm [resolvable:$true] %s65_s22 }
   0xd   :  { %v54_v7 = vand.u32 127, %v53_v6  ;;  %s63_s19 = sshll.u32 %s161_s1, 4  ;;  %s64_s19 = int_to_ptr.vmem [resolvable:$true] %s63_s19 }
   0xf   :  { %vm55_vm1 = vcmp.eq.s32.totalorder %v54_v7, 0 }
  0x7e   :  { %v44_v2 = vpop.permute.xlu0 %43 }
  0x7f   :  { %v46_v3 = vsub.f32 %v40_v1, %v44_v2 }
  0x81   :  { %v47_v4 = vmul.f32 %v46_v3, %v46_v3 }
  0x83   :  { %v50_v5 = vsel %vm49_vm0, %v47_v4, 0.0 }
  0x84   :  { %51 = vadd.xlane.f32.xlu0 %v50_v5 }
  0xf7   :  { %v52_v8 = vpop.xlane.xlu0 %51 }
  0xf8   :  { %v56_v9 = vsel %vm55_vm1, %v52_v8, 0.0 }
  0xf9   :  { %57 = vst [vmem:[#allocation7] sm:$0xff] %v56_v9 }
  0xfa   :  { %68 = dma.vmem_to_hbm [thread:$0]  %s64_s19, 128, %s66_s22, [#allocation4]  }
  0xfb   :  { %156 = dma.done.wait [#allocation4], 128  }
  0xfc   :  { %157 = vsyncadd [#allocation4], 4294967168 }
  0xfd   :  { %73 = vsyncpa [#allocation3], 1 }
  0xfe   :  { %74 = vsyncpa [#allocation6], 1 }
  0xff   :  { %75 = vsyncpa [#allocation4], 1 }

</bundles_post_ra>
